<compile_context>
chip_gen: v6e
topology: v6e:2x2x1
jax: 0.10.0
libtpu: 0.0.40
codegen_flags: <defaults>
</compile_context>

<pallas_src>
import functools

import jax
import jax.numpy as jnp
from jax import random
from jax.experimental import pallas as pl
from jax.experimental.pallas import tpu as pltpu


def _rup(a, b):
    return (a + b - 1) // b * b


def _pick_tile(d):
    """Pick a tile size (multiple of 128) dividing the padded dim."""
    dp = _rup(d, 128)
    for c in (512, 384, 256, 128):
        if dp % c == 0:
            return c, dp
    return 128, dp


# --------------------- Pallas matmul with fused affine+act epilogue ---------------------
def _mm_epi_kernel(a_ref, b_ref, s_ref, t_ref, o_ref, acc_ref, *, slope):
    k = pl.program_id(2)

    @pl.when(k == 0)
    def _():
        acc_ref[...] = jnp.zeros_like(acc_ref)

    acc_ref[...] += jnp.dot(a_ref[...], b_ref[...], preferred_element_type=jnp.float32)

    @pl.when(k == pl.num_programs(2) - 1)
    def _():
        y = acc_ref[...] * s_ref[...] + t_ref[...]
        o_ref[...] = jnp.where(y >= 0.0, y, slope * y).astype(o_ref.dtype)


def matmul_fused(a, b, scale, shift, slope, out_dtype):
    """(M,K)bf16 @ (K,N)bf16 -> act(out*scale + shift) with f32 accumulation."""
    M, K = a.shape
    _, N = b.shape
    tm, Mp = _pick_tile(M)
    tn, Np = _pick_tile(N)
    tk, Kp = _pick_tile(K)
    ap = jnp.pad(a, ((0, Mp - M), (0, Kp - K)))
    bp = jnp.pad(b, ((0, Kp - K), (0, Np - N)))
    sp = jnp.pad(scale.astype(jnp.float32), (0, Np - N)).reshape(1, Np)
    tp = jnp.pad(shift.astype(jnp.float32), (0, Np - N)).reshape(1, Np)
    out = pl.pallas_call(
        functools.partial(_mm_epi_kernel, slope=float(slope)),
        out_shape=jax.ShapeDtypeStruct((Mp, Np), out_dtype),
        grid_spec=pltpu.PrefetchScalarGridSpec(
            num_scalar_prefetch=0,
            grid=(Mp // tm, Np // tn, Kp // tk),
            in_specs=[
                pl.BlockSpec((tm, tk), lambda i, j, k: (i, k)),
                pl.BlockSpec((tk, tn), lambda i, j, k: (k, j)),
                pl.BlockSpec((1, tn), lambda i, j, k: (0, j)),
                pl.BlockSpec((1, tn), lambda i, j, k: (0, j)),
            ],
            out_specs=pl.BlockSpec((tm, tn), lambda i, j, k: (i, j)),
            scratch_shapes=[pltpu.VMEM((tm, tn), jnp.float32)],
        ),
        compiler_params=pltpu.CompilerParams(
            dimension_semantics=("parallel", "parallel", "arbitrary"),
        ),
    )(ap, bp, sp, tp)
    return out[:M, :N]


# --------------------- Fused per-channel affine + (Leaky)ReLU (bn1 path) ---------------------
def _affine_act_kernel(x_ref, s_ref, t_ref, o_ref, *, slope):
    y = x_ref[...] * s_ref[...] + t_ref[...]
    o_ref[...] = jnp.where(y >= 0.0, y, slope * y).astype(o_ref.dtype)


def affine_act_cl(x, scale, shift, slope, out_dtype=jnp.float32):
    """act(x*scale + shift) on channels-last (B,H,W,C); scale/shift are (C,)."""
    B, H, W, C = x.shape
    R = B * H * W
    x2 = x.reshape(R, C).astype(jnp.float32)
    Rp = _rup(R, 16)
    if Rp <= 4096:
        tr = Rp
    else:
        tr = 512
        Rp = _rup(R, tr)
    xp = jnp.pad(x2, ((0, Rp - R), (0, 0)))
    s2 = scale.astype(jnp.float32).reshape(1, C)
    t2 = shift.astype(jnp.float32).reshape(1, C)
    out = pl.pallas_call(
        functools.partial(_affine_act_kernel, slope=float(slope)),
        out_shape=jax.ShapeDtypeStruct((Rp, C), out_dtype),
        grid=(Rp // tr,),
        in_specs=[
            pl.BlockSpec((tr, C), lambda i: (i, 0)),
            pl.BlockSpec((1, C), lambda i: (0, 0)),
            pl.BlockSpec((1, C), lambda i: (0, 0)),
        ],
        out_specs=pl.BlockSpec((tr, C), lambda i: (i, 0)),
    )(xp, s2, t2)
    return out[:R].reshape(B, H, W, C)


# --------------------- Global average pool over spatial (channels-last) ---------------------
def _gap_kernel(x_ref, o_ref, *, denom):
    o_ref[...] = jnp.sum(x_ref[...], axis=1) * (1.0 / denom)


def global_avgpool_cl(x):
    """(B,H,W,C) -> (B,C) mean over H*W."""
    B, H, W, C = x.shape
    HW = H * W
    x3 = x.reshape(B, HW, C).astype(jnp.float32)
    HWp = _rup(HW, 8)
    xp = jnp.pad(x3, ((0, 0), (0, HWp - HW), (0, 0)))
    return pl.pallas_call(
        functools.partial(_gap_kernel, denom=float(HW)),
        out_shape=jax.ShapeDtypeStruct((B, C), jnp.float32),
        grid=(1,),
        in_specs=[pl.BlockSpec((B, HWp, C), lambda i: (0, 0, 0))],
        out_specs=pl.BlockSpec((B, C), lambda i: (0, 0)),
    )(xp)


# --------------------- Fused SE-scale * out + residual + (Leaky)ReLU ---------------------
def _se_res_kernel(out_ref, res_ref, se_ref, o_ref, *, slope):
    y = out_ref[...] * se_ref[...] + res_ref[...]
    o_ref[...] = jnp.where(y >= 0.0, y, slope * y)


def se_residual_act_cl(out, residual, se, slope):
    """act(out * se[b, c] + residual) on (B,H,W,C); se is (B,C) — never broadcast to HBM."""
    B, H, W, C = out.shape
    HW = H * W
    o3 = out.reshape(B, HW, C).astype(jnp.float32)
    r3 = residual.reshape(B, HW, C).astype(jnp.float32)
    HWp = _rup(HW, 8)
    if HWp <= 4096:
        tr = HWp
    else:
        tr = 1024
        HWp = _rup(HW, tr)
    o3 = jnp.pad(o3, ((0, 0), (0, HWp - HW), (0, 0)))
    r3 = jnp.pad(r3, ((0, 0), (0, HWp - HW), (0, 0)))
    se3 = se.astype(jnp.float32).reshape(B, 1, C)
    y = pl.pallas_call(
        functools.partial(_se_res_kernel, slope=float(slope)),
        out_shape=jax.ShapeDtypeStruct((B, HWp, C), jnp.float32),
        grid=(B, HWp // tr),
        in_specs=[
            pl.BlockSpec((1, tr, C), lambda b, i: (b, i, 0)),
            pl.BlockSpec((1, tr, C), lambda b, i: (b, i, 0)),
            pl.BlockSpec((1, 1, C), lambda b, i: (b, 0, 0)),
        ],
        out_specs=pl.BlockSpec((1, tr, C), lambda b, i: (b, i, 0)),
    )(o3, r3, se3)
    return y[:, :HW, :].reshape(B, H, W, C)


# --------------------------------- Convolution (channels-last) ---------------------------------
def conv_cl(x, w_mat, kh, kw, stride_w, scale, shift, slope, out_dtype):
    """Conv with kernel (kh,kw), stride (1,stride_w), 'same'-style padding ((kh-1)//2,(kw-1)//2),
    lowered to bf16 im2col + fused-epilogue Pallas matmul.  x: (B,H,W,Cin) channels-last."""
    B, H, W, Cin = x.shape
    ph, pw = (kh - 1) // 2, (kw - 1) // 2
    Hout = H + 2 * ph - kh + 1
    Wout = (W + 2 * pw - kw) // stride_w + 1
    xb = x.astype(jnp.bfloat16)
    if ph or pw:
        xb = jnp.pad(xb, ((0, 0), (ph, ph), (pw, pw), (0, 0)))
    taps = []
    for i in range(kh):
        for j in range(kw):
            taps.append(xb[:, i : i + Hout, j : j + stride_w * (Wout - 1) + 1 : stride_w, :])
    if len(taps) == 1:
        col = taps[0].reshape(B * Hout * Wout, Cin)
    else:
        col = jnp.stack(taps, axis=3).reshape(B * Hout * Wout, kh * kw * Cin)
    y = matmul_fused(col, w_mat, scale, shift, slope, out_dtype)
    return y.reshape(B, Hout, Wout, -1)


# ------------------------------------- ResSe block -------------------------------------
def resse_forward(x, bp, stride, slope):
    """ResSeBlock1d/2d forward (res=True, se=True, eval), channels-last.  1-D blocks use H=1."""
    residual = x
    # bn1 + act (cannot fold through the nonlinearity); output bf16 feeds the conv patches.
    h = affine_act_cl(x, bp["bn1_s"], bp["bn1_t"], slope, out_dtype=jnp.bfloat16)
    # conv1 with bn2 + act fused into the matmul epilogue; bf16 output feeds conv2 directly.
    out = conv_cl(h, bp["w1"], bp["kh1"], bp["kw1"], stride,
                  bp["bn2_s"], bp["bn2_t"], slope, jnp.bfloat16)
    # conv2 (no BN/act after it): identity epilogue, f32 output for SE / residual math.
    out = conv_cl(out, bp["w2"], bp["kh2"], bp["kw2"], 1,
                  bp["one"], bp["zero"], 1.0, jnp.float32)
    # Squeeze-and-excite (tiny FCs stay in plain jnp — far below one MXU tile).
    pooled = global_avgpool_cl(out)                                           # (B, C)
    z = jnp.dot(pooled, bp["fc1_wT"], preferred_element_type=jnp.float32) + bp["fc1_b"][None, :]
    z = jnp.where(z >= 0.0, z, slope * z)
    se = jax.nn.sigmoid(
        jnp.dot(z, bp["fc2_wT"], preferred_element_type=jnp.float32) + bp["fc2_b"][None, :]
    )                                                                          # (B, C)
    if "wd" in bp:
        # downsample: 1x1 strided conv with its BatchNorm folded into the epilogue (no act).
        residual = conv_cl(x, bp["wd"], 1, 1, stride,
                           bp["dbn_s"], bp["dbn_t"], 1.0, jnp.float32)
    return se_residual_act_cl(out, residual, se, slope)


# ------------------------------ Parameter construction / folding ------------------------------
class KeyGen:
    def __init__(self, seed=0):
        self._k = random.PRNGKey(seed)
        self._i = 0

    def __call__(self):
        self._i += 1
        return random.fold_in(self._k, self._i)


def init_conv(kg, cout, cin, kh, kw):
    fan_in = cin * kh * kw
    return random.normal(kg(), (cout, cin, kh, kw), jnp.float32) / jnp.sqrt(float(fan_in))


def init_bn(kg, c):
    return dict(
        gamma=1.0 + 0.1 * random.normal(kg(), (c,), jnp.float32),
        beta=0.1 * random.normal(kg(), (c,), jnp.float32),
        mean=0.1 * random.normal(kg(), (c,), jnp.float32),
        var=1.0 + 0.1 * jnp.abs(random.normal(kg(), (c,), jnp.float32)),
    )


def init_linear(kg, cout, cin):
    w = random.normal(kg(), (cout, cin), jnp.float32) / jnp.sqrt(float(cin))
    b = 0.01 * random.normal(kg(), (cout,), jnp.float32)
    return w, b


def init_resse(kg, cin, cout, k1, k2, stride):
    p = {
        "conv1_w": init_conv(kg, cout, cin, *k1),
        "bn1": init_bn(kg, cin),
        "conv2_w": init_conv(kg, cout, cout, *k2),
        "bn2": init_bn(kg, cout),
    }
    if stride != 1 or cin != cout:
        p["down_w"] = init_conv(kg, cout, cin, 1, 1)
        p["down_bn"] = init_bn(kg, cout)
    hidden = int(round(cout / 16))
    p["fc1_w"], p["fc1_b"] = init_linear(kg, hidden, cout)
    p["fc2_w"], p["fc2_b"] = init_linear(kg, cout, hidden)
    return p


SIZES = [[3, 3, 3, 3, 3, 3], [7, 7, 7, 7, 3, 3], [5, 5, 5, 5, 3, 3]]
STRIDES_1D = (2, 1, 2, 1, 2, 1, 2, 1)


def init_model(seed=0):
    kg = KeyGen(seed)
    P = {}
    P["conv0_w"] = init_conv(kg, 32, 1, 1, 51)
    P["conv0_b"] = 0.01 * random.normal(kg(), (32,), jnp.float32)
    P["bn0"] = init_bn(kg, 32)
    P["conv1"] = init_resse(kg, 32, 32, (1, 15), (1, 15), 2)
    P["conv2"] = init_resse(kg, 32, 32, (1, 15), (1, 15), 2)
    P["conv3"] = init_resse(kg, 32, 32, (1, 15), (1, 15), 2)
    P["b2d"], P["b1d"] = [], []
    for s in SIZES:
        blocks = [init_resse(kg, 32, 32, (s[0], s[1]), (s[0], s[1]), 1)]
        for _ in range(3):
            blocks.append(init_resse(kg, 32, 32, (s[2], s[3]), (s[2], s[3]), 1))
        P["b2d"].append(blocks)
    for s in SIZES:
        b = [
            init_resse(kg, 384, 384, (1, s[0]), (1, s[1]), 2),
            init_resse(kg, 384, 384, (1, s[0]), (1, s[1]), 1),
            init_resse(kg, 384, 384, (1, s[2]), (1, s[3]), 2),
            init_resse(kg, 384, 384, (1, s[2]), (1, s[3]), 1),
            init_resse(kg, 384, 384, (1, s[4]), (1, s[5]), 2),
            init_resse(kg, 384, 384, (1, s[4]), (1, s[5]), 1),
            init_resse(kg, 384, 384, (1, s[4]), (1, s[5]), 2),
            init_resse(kg, 384, 384, (1, s[4]), (1, s[5]), 1),
        ]
        P["b1d"].append(b)
    P["fc_w"], P["fc_b"] = init_linear(kg, 2, 384 * len(SIZES))
    return P


def _bn_affine(bn, eps=1e-5):
    s = bn["gamma"] / jnp.sqrt(bn["var"] + eps)
    t = bn["beta"] - bn["mean"] * s
    return s, t


def _conv_mat(w):
    """PyTorch (Cout,Cin,KH,KW) -> bf16 (KH*KW*Cin, Cout) matching the im2col column order."""
    cout, cin, kh, kw = w.shape
    m = jnp.transpose(w, (2, 3, 1, 0)).reshape(kh * kw * cin, cout).astype(jnp.bfloat16)
    return m, kh, kw


def prepare_resse(p):
    """Fold eval-mode BatchNorms into conv epilogues / affine params; cast weights to bf16."""
    bp = {}
    bp["bn1_s"], bp["bn1_t"] = _bn_affine(p["bn1"])
    bp["bn2_s"], bp["bn2_t"] = _bn_affine(p["bn2"])
    bp["w1"], bp["kh1"], bp["kw1"] = _conv_mat(p["conv1_w"])
    bp["w2"], bp["kh2"], bp["kw2"] = _conv_mat(p["conv2_w"])
    cout = p["conv2_w"].shape[0]
    bp["one"] = jnp.ones((cout,), jnp.float32)
    bp["zero"] = jnp.zeros((cout,), jnp.float32)
    if "down_w" in p:
        bp["wd"], _, _ = _conv_mat(p["down_w"])
        bp["dbn_s"], bp["dbn_t"] = _bn_affine(p["down_bn"])
    bp["fc1_wT"] = p["fc1_w"].T
    bp["fc1_b"] = p["fc1_b"]
    bp["fc2_wT"] = p["fc2_w"].T
    bp["fc2_b"] = p["fc2_b"]
    return bp


def prepare_model(P):
    M = {}
    s0, t0 = _bn_affine(P["bn0"])
    M["conv0_w"], M["conv0_kh"], M["conv0_kw"] = _conv_mat(P["conv0_w"])
    M["conv0_s"] = s0
    M["conv0_t"] = P["conv0_b"] * s0 + t0         # conv bias folded with bn0
    M["conv1"] = prepare_resse(P["conv1"])
    M["conv2"] = prepare_resse(P["conv2"])
    M["conv3"] = prepare_resse(P["conv3"])
    M["b2d"] = [[prepare_resse(b) for b in branch] for branch in P["b2d"]]
    M["b1d"] = [[prepare_resse(b) for b in branch] for branch in P["b1d"]]
    M["fc_wT"] = P["fc_w"].T
    M["fc_b"] = P["fc_b"]
    return M


# ------------------------------------------ Forward ------------------------------------------
def model_forward(x, M):
    """x: (B, channels=12, seq_len) f32 -> (B, 2) softmax probabilities (eval mode)."""
    x = x.astype(jnp.float32)[:, :, :, None]        # unsqueeze(1) in channels-last: (B, 12, L, 1)
    # conv0 with bias + bn0 + ReLU fused into the matmul epilogue.
    x = conv_cl(x, M["conv0_w"], M["conv0_kh"], M["conv0_kw"], 2,
                M["conv0_s"], M["conv0_t"], 0.0, jnp.float32)
    x = resse_forward(x, M["conv1"], 2, 0.0)         # ReLU blocks (2-D)
    x = resse_forward(x, M["conv2"], 2, 0.0)
    x = resse_forward(x, M["conv3"], 2, 0.0)
    # Dropout: identity in eval mode.
    feats = []
    for i in range(len(SIZES)):
        x1 = x
        for bp in M["b2d"][i]:
            x1 = resse_forward(x1, bp, 1, 0.0)
        # torch.flatten(dim 1..2) on NCHW == fold (C,H) into the channel axis (c*H + h order).
        B, H, W, C = x1.shape
        x1 = jnp.transpose(x1, (0, 2, 3, 1)).reshape(B, 1, W, C * H)
        for bp, s in zip(M["b1d"][i], STRIDES_1D):
            x1 = resse_forward(x1, bp, s, 0.01)      # LeakyReLU blocks (1-D)
        feats.append(global_avgpool_cl(x1))          # AdaptiveAvgPool1d(1) -> (B, 384)
    out = jnp.concatenate(feats, axis=1)             # (B, 1152)
    logits = jnp.dot(out, M["fc_wT"], preferred_element_type=jnp.float32) + M["fc_b"][None, :]
    return jax.nn.softmax(logits, axis=-1)


if __name__ == "__main__":
    # Input needs 12 "electrode" channels so that 32 * 12 == 384 for the 1-D stage.
    params = init_model(seed=0)
    prepped = prepare_model(params)
    x = random.normal(random.PRNGKey(0), (2, 12, 128), jnp.float32)
    out = model_forward(x, prepped)
    out = jax.block_until_ready(out)
    assert out.shape == (2, 2), out.shape
    assert bool(jnp.all(jnp.isfinite(out)))
    print("KERNEL_OK")
</pallas_src>

<mosaic_0001>
module attributes {stable_mosaic.version = 11 : i64} {
  func.func @_mm_epi_kernel(%arg0: i32, %arg1: i32, %arg2: i32, %arg3: memref<512x128xbf16, #tpu.memory_space<vmem>>, %arg4: memref<128x128xbf16, #tpu.memory_space<vmem>>, %arg5: memref<1x128xf32, #tpu.memory_space<vmem>>, %arg6: memref<1x128xf32, #tpu.memory_space<vmem>>, %arg7: memref<512x128xf32, #tpu.memory_space<vmem>>, %arg8: memref<512x128xf32, #tpu.memory_space<vmem>>) attributes {dimension_semantics = [#tpu.dimension_semantics<parallel>, #tpu.dimension_semantics<parallel>, #tpu.dimension_semantics<arbitrary>], iteration_bounds = array<i64: 3, 1, 1>, scalar_prefetch = 0 : i64, scratch_operands = 1 : i64, tpu.core_type = #tpu.core_type<tc>, window_params = [{transform_indices = @transform_0, window_bounds = array<i64: 512, 128>}, {transform_indices = @transform_1, window_bounds = array<i64: 128, 128>}, {transform_indices = @transform_2, window_bounds = array<i64: 1, 128>}, {transform_indices = @transform_3, window_bounds = array<i64: 1, 128>}, {transform_indices = @transform_4, window_bounds = array<i64: 512, 128>}]} {
    %c0_i32 = arith.constant 0 : i32
    %0 = arith.cmpi eq, %arg2, %c0_i32 : i32
    %1 = arith.extui %0 : i1 to i32
    %c0_i32_0 = arith.constant 0 : i32
    %2 = arith.cmpi ne, %1, %c0_i32_0 : i32
    scf.if %2 {
      %cst_10 = arith.constant 0.000000e+00 : f32
      %12 = vector.broadcast %cst_10 : f32 to vector<512x128xf32>
      %c0_11 = arith.constant 0 : index
      %c0_12 = arith.constant 0 : index
      %13 = vector.load %arg8[%c0_11, %c0_12] : memref<512x128xf32, #tpu.memory_space<vmem>>, vector<512x128xf32>
      tpu.vector_store %arg8[%c0_11, %c0_12], %12 {strides = array<i32>} : memref<512x128xf32, #tpu.memory_space<vmem>>, vector<512x128xf32>,
    } else {
    }
    %c0 = arith.constant 0 : index
    %c0_1 = arith.constant 0 : index
    %3 = vector.load %arg8[%c0, %c0_1] : memref<512x128xf32, #tpu.memory_space<vmem>>, vector<512x128xf32>
    %c0_2 = arith.constant 0 : index
    %c0_3 = arith.constant 0 : index
    %4 = vector.load %arg3[%c0_2, %c0_3] : memref<512x128xbf16, #tpu.memory_space<vmem>>, vector<512x128xbf16>
    %c0_4 = arith.constant 0 : index
    %c0_5 = arith.constant 0 : index
    %5 = vector.load %arg4[%c0_4, %c0_5] : memref<128x128xbf16, #tpu.memory_space<vmem>>, vector<128x128xbf16>
    %cst = arith.constant dense<0.000000e+00> : vector<512x128xf32>
    %6 = tpu.matmul %4, %5, %cst {dimension_numbers = #tpu.dot_dimension_numbers<[1], [0], [0], [1], [0, 0, 1, 1], [], []>} : vector<512x128xbf16>, vector<128x128xbf16>, vector<512x128xf32> -> vector<512x128xf32>
    %7 = arith.addf %3, %6 : vector<512x128xf32>
    %c0_6 = arith.constant 0 : index
    %c0_7 = arith.constant 0 : index
    %8 = vector.load %arg8[%c0_6, %c0_7] : memref<512x128xf32, #tpu.memory_space<vmem>>, vector<512x128xf32>
    tpu.vector_store %arg8[%c0_6, %c0_7], %7 {strides = array<i32>} : memref<512x128xf32, #tpu.memory_space<vmem>>, vector<512x128xf32>,
    %c0_i32_8 = arith.constant 0 : i32
    %9 = arith.cmpi eq, %arg2, %c0_i32_8 : i32
    %10 = arith.extui %9 : i1 to i32
    %c0_i32_9 = arith.constant 0 : i32
    %11 = arith.cmpi ne, %10, %c0_i32_9 : i32
    scf.if %11 {
      %c0_10 = arith.constant 0 : index
      %c0_11 = arith.constant 0 : index
      %12 = vector.load %arg8[%c0_10, %c0_11] : memref<512x128xf32, #tpu.memory_space<vmem>>, vector<512x128xf32>
      %c0_12 = arith.constant 0 : index
      %c0_13 = arith.constant 0 : index
      %13 = vector.load %arg5[%c0_12, %c0_13] : memref<1x128xf32, #tpu.memory_space<vmem>>, vector<1x128xf32>
      %14 = vector.broadcast %13 : vector<1x128xf32> to vector<512x128xf32>
      %15 = arith.mulf %12, %14 : vector<512x128xf32>
      %c0_14 = arith.constant 0 : index
      %c0_15 = arith.constant 0 : index
      %16 = vector.load %arg6[%c0_14, %c0_15] : memref<1x128xf32, #tpu.memory_space<vmem>>, vector<1x128xf32>
      %17 = vector.broadcast %16 : vector<1x128xf32> to vector<512x128xf32>
      %18 = arith.addf %15, %17 : vector<512x128xf32>
      %cst_16 = arith.constant 0.000000e+00 : f32
      %19 = vector.broadcast %cst_16 : f32 to vector<512x128xf32>
      %20 = arith.cmpf oge, %18, %19 : vector<512x128xf32>
      %cst_17 = arith.constant 0.000000e+00 : f32
      %21 = vector.broadcast %cst_17 : f32 to vector<512x128xf32>
      %22 = arith.mulf %21, %18 : vector<512x128xf32>
      %23 = arith.select %20, %18, %22 : vector<512x128xi1>, vector<512x128xf32>
      %c0_18 = arith.constant 0 : index
      %c0_19 = arith.constant 0 : index
      %24 = vector.load %arg7[%c0_18, %c0_19] : memref<512x128xf32, #tpu.memory_space<vmem>>, vector<512x128xf32>
      tpu.vector_store %arg7[%c0_18, %c0_19], %23 {strides = array<i32>} : memref<512x128xf32, #tpu.memory_space<vmem>>, vector<512x128xf32>,
    } else {
    }
    return
  }
  func.func @transform_0(%arg0: i32, %arg1: i32, %arg2: i32) -> (i32, i32) {
    %c0_i32 = arith.constant 0 : i32
    return %arg0, %arg2 : i32, i32
  }
  func.func @transform_1(%arg0: i32, %arg1: i32, %arg2: i32) -> (i32, i32) {
    %c0_i32 = arith.constant 0 : i32
    return %arg2, %arg1 : i32, i32
  }
  func.func @transform_2(%arg0: i32, %arg1: i32, %arg2: i32) -> (i32, i32) {
    %c0_i32 = arith.constant 0 : i32
    %c0_i32_0 = arith.constant 0 : i32
    return %c0_i32, %arg1 : i32, i32
  }
  func.func @transform_3(%arg0: i32, %arg1: i32, %arg2: i32) -> (i32, i32) {
    %c0_i32 = arith.constant 0 : i32
    %c0_i32_0 = arith.constant 0 : i32
    return %c0_i32, %arg1 : i32, i32
  }
  func.func @transform_4(%arg0: i32, %arg1: i32, %arg2: i32) -> (i32, i32) {
    %c0_i32 = arith.constant 0 : i32
    return %arg0, %arg1 : i32, i32
  }
}

</mosaic_0001>

<bundles_post_ra>
// kernel: tpu_custom_call.1
= control target key start
LH: loop header
LB: loop body
LE: loop exit
PB: predicated region body
PF: predicated region fallthrough
CT: control target
= control target key end

     0   :  { %s2707_s0 = inlined_call_operand.hbm [shape: bf16[1536,128], index: 0, kind: input, shape index: {}]   ;;  %s2708_s1 = inlined_call_operand.hbm [shape: bf16[128,128], index: 1, kind: input, shape index: {}]   ;;  %s2709_s2 = inlined_call_operand.vmem [shape: f32[1,128], index: 2, kind: input, shape index: {}]   ;;  %s2710_s3 = inlined_call_operand.vmem [shape: f32[1,128], index: 3, kind: input, shape index: {}]   ;;  %s2711_s4 = inlined_call_operand.hbm [shape: f32[1536,128], index: 4, kind: output, shape index: {}]  }
   0x1   :  { %2715 = sst [smem:[#allocation12_spill]] %s2708_s1 }
   0x2   :  { %9 = vsyncpa [#allocation4], 0 }
   0x3   :  { %11 = vsyncpa [#allocation4 + $0x1], 0 }
   0x4   :  { %12 = vsyncpa [#allocation7], 0 }
   0x5   :  { %13 = vsyncpa [#allocation5], 0 }
   0x6   :  { %15 = vsyncpa [#allocation5 + $0x1], 0  ;;  %s2261_s15 = smov 0   ;;  %s2263_s16 = smov 0  }
   0x7   :  { %s2265_s17 = smov 0   ;;  %s2267_s18 = smov 0  }
   0x8   :  { %s2269_s19 = smov 0   ;;  %s2271_s20 = smov 0  }
   0x9 LB: > { %s1773_s21 = sadd.s32 4294967295, %s2227_s20   ;;  %s1774_s22 = sadd.s32 4294967294, %s2227_s20   ;;  %s2227_s20 = sphi %s2271_s20, %s21_s20   ;;  %s2223_s19 = sphi %s2269_s19, %s2734_s19   ;;  %s2219_s18 = sphi %s2267_s18, %s2733_s18   ;;  %s2215_s17 = sphi %s2265_s17, %s2732_s17   ;;  %s2211_s16 = sphi %s2263_s16, %s2731_s16   ;;  %s2207_s15 = sphi %s2261_s15, %s2730_s15  }
   0xa   : > { %p62_p0 = scmp.ne.s32.totalorder %s2211_s16, %s2207_s15  ;;  %p2295_p1 = scmp.eq.s32.totalorder %s1773_s21, 0 }
   0xb   : > { %p2299_p2 = scmp.eq.s32.totalorder %s1773_s21, 2  ;;  %p174_p3 = scmp.eq.s32.totalorder %s1774_s22, 2 }
   0xc   : > { %p2305_p4 = por %p2295_p1, %p62_p0  ;;  %p1775_p5 = scmp.ge.s32.totalorder %s2227_s20, 1 }
   0xd   : > { %p2310_p6 = por %p174_p3, %p62_p0  ;;  %p181_p7 = scmp.lt.s32.totalorder %s2227_s20, 4 }
   0xe   : > { %s2229_s28 = smov [#allocation6]   ;;  %s40_s5 = sadd.s32 1, %s2223_s19 }
   0xf   : > { %s2719_s26 = scalar_select %p2310_p6, 1, 0 }
  0x10   : > { %p2315_p8 = pnand %p1775_p5, %p181_p7  ;;  %s197_s29 = sshll.u32 %s2229_s28, 4  ;;  %s198_s29 = int_to_ptr.vmem [resolvable:$true] %s197_s29 }
  0x11   : > { %s2100_s6 = scalar_lea.vmem %s198_s29, 1024  ;;  %p2108_p3 = scmp.lt.s32.totalorder %s198_s29, %s198_s29 }
  0x12   : > { %p1980_p9 = pneg %p2315_p8  ;;  %p2101_p12 = scmp.ne.s32.totalorder %s198_s29, %s2100_s6 }
  0x13   : > { %p2109_p5 = scmp.lt.s32.totalorder %s2100_s6, %s2100_s6 }
  0x14   : > { %p2323_p10 = pnand %p1980_p9, %p2295_p1 }
  0x15   : > { %p2110_p7 = por %p2109_p5, %p2108_p3 }
  0x16   : > { %p2091_p11 = pneg %p2323_p10 }
  0x18   : > { %p2103_p13 = pnand %p2101_p12, %p2091_p11 }
  0x1a   : > { %p2104_p0 = pneg %p2103_p13 }
  0x1c   : > { %p2111_p6 = pnand %p2110_p7, %p2104_p0 }
  0x1e   : > { %2114 = shalt.err (!%p2111_p6)
}
  0x1f   : > { %s2712_s7 = smov 64   ;;  %s2713_s8 = smov 4  }
  0x20   : > { %s2722_s1 = sld [smem:[#allocation12_spill]]  ;;  %p42_p6 = scmp.ge.s32.totalorder %s40_s5, 3 }
  0x21   : > { %s49_s11 = sadd.s32 1, %s2215_s17  ;;  %p56_p9 = scmp.ne.s32.totalorder %s2215_s17, %s2211_s16 }
  0x22   : > { %p57_p11 = scmp.eq.s32.totalorder %s2227_s20, 0  ;;  %s2736_s5 = smov (%p42_p6, %s40_s5), 0 }
  0x23   : > { %p2350_p13 = por %p2299_p2, %p56_p9  ;;  %s44_s14 = ssub.s32 %s2223_s19, %s2736_s5 }
  0x24   : > { %p2344_p12 = por %p57_p11, %p56_p9  ;;  %p1993_p0 = scmp.lt.s32.totalorder %s2227_s20, 3 }
  0x25   : > { %s2724_s13 = scalar_select %p2350_p13, 1, 0 }
  0x26   : > { %1983 = dma.hbm_to_vmem [thread:$0]  (!%p2323_p10), %s2722_s1, 1024, %s198_s29, [#allocation7], %s2712_s7, %s2712_s7, %s2713_s8  }
  0x27   : > { %p47_p10 = scmp.eq.s32.totalorder %s44_s14, 0  ;;  %s223_s21 = sand.u32 1, %s2215_s17  }
  0x28   : > { %s1780_s22 = sshll.u32 %s223_s21, 8  ;;  %s1834_s29 = sshll.u32 %s2223_s19, 12 }
  0x29   : > { %s2359_s28 = scalar_select %p47_p10, %s2215_s17, %s49_s11  }
  0x2a   : > { %s234_s9 = scalar_lea.hbm %s2707_s0, %s1834_s29  ;;  %s227_s10 = scalar_lea.vmem [#allocation3], %s1780_s22 }
  0x2b   : > { %s235_s7 = sshll.u32 %s227_s10, 4  ;;  %p2367_p2 = pnand %p1993_p0, %p2344_p12  ;;  %s236_s7 = int_to_ptr.vmem [resolvable:$true] %s235_s7 }
  0x2c   : > { %s224_s8 = scalar_lea.sflag [#allocation4], %s223_s21  ;;  %s2128_s14 = scalar_lea.vmem %s236_s7, 4096 }
  0x2d   : > { %p2117_p3 = pneg %p2367_p2  ;;  %p2129_p5 = scmp.ne.s32.totalorder %s236_s7, %s2128_s14 }
  0x2e   : > { %s2232_s11 = smov [#allocation3]  }
  0x2f   : > { %p2131_p7 = pnand %p2129_p5, %p2117_p3  ;;  %s2133_s1 = sshll.u32 %s2232_s11, 4  ;;  %s2134_s1 = int_to_ptr.vmem [resolvable:$false] %s2133_s1 }
  0x30   : > { %s2135_s29 = scalar_lea.vmem %s2134_s1, 8192  ;;  %p2136_p9 = scmp.lt.s32.totalorder %s236_s7, %s2134_s1 }
  0x31   : > { %p2132_p6 = pneg %p2131_p7  ;;  %p2137_p11 = scmp.lt.s32.totalorder %s2135_s29, %s2128_s14 }
  0x33   : > { %p2138_p10 = por %p2137_p11, %p2136_p9 }
  0x35   : > { %p2139_p13 = pnand %p2138_p10, %p2132_p6 }
  0x37   : > { %2142 = shalt.err (!%p2139_p13)
}
  0x38   : > { %s2726_s12 = smov 4   ;;  %s2727_s22 = smov 64  }
  0x39   : > { %1987 = dma.hbm_to_vmem [thread:$0]  (!%p2367_p2), %s234_s9, 4096, %s236_s7, %s224_s8, %s2727_s22, %s2727_s22, %s2726_s12  }
  0x3a   : > { %247 = sbr.rel (%p2315_p8) target bundleno = 391 (0x187), region = 36  ;;  %s2381_s21 = sand.u32 (!%p2315_p8), 1, %s2211_s16  }
  0x3b   : > { %s1784_s1 = sshll.u32 (!%p2315_p8), %s2381_s21, 8  ;;  %s250_s30 = scalar_lea.sflag (!%p2315_p8), [#allocation4], %s2381_s21 }
  0x3c   : > { %s2385_s6 = scalar_lea.vmem (!%p2315_p8), [#allocation3], %s1784_s1 }
  0x3f   : > { %2194 = dma.done.wait (%p2305_p4), %s250_s30, 4096  }
  0x40   : > { %2196 = vsyncadd (%p2305_p4), %s250_s30, 4294963200 }
  0x41   : > { %2198 = dma.done.wait (%p2295_p1), [#allocation7], 1024  }
  0x42   : > { %2200 = vsyncadd (%p2295_p1), [#allocation7], 4294966272  ;;  %v2049_v0 = vld [vmem:[#allocation6 + $0x38] sm:$0xff]   ;;  %v2050_v1 = vld [vmem:[#allocation6 + $0x30] sm:$0xff]   ;;  %s1786_s8 = sshll.u32 %s2381_s21, 9  ;;  %s1835_s10 = sshll.u32 %s2219_s18, 13 }
  0x43   : > { %1876 = vmatprep.subr.bf16.mxu0 %v2049_v0  ;;  %1956 = vmatprep.subr.bf16.mxu1 %v2049_v0  ;;  %v2051_v2 = vld [vmem:[#allocation6 + $0x28] sm:$0xff]   ;;  %v2052_v3 = vld [vmem:[#allocation6 + $0x20] sm:$0xff]   ;;  %v2053_v6 = vld [vmem:[#allocation6 + $0x18] sm:$0xff]   ;;  %s2450_s9 = scalar_lea.vmem [#allocation8], %s1786_s8  ;;  %s2654_s11 = scalar_lea.hbm %s2711_s4, %s1835_s10 }
  0x44   : > { %1877 = vmatpush3.bf16.msra.mxu0 %v2049_v0  ;;  %1964 = vmatpush3.bf16.msra.mxu1 %v2049_v0  ;;  %v2057_v4 = vld [vmem:[%s2385_s6] sm:$0xff]   ;;  %v2054_v7 = vld [vmem:[#allocation6 + $0x10] sm:$0xff]   ;;  %v2055_v8 = vld [vmem:[#allocation6 + $0x8] sm:$0xff]   ;;  %s1647_s24 = sshll.u32 %s2450_s9, 4  ;;  %s1633_s29 = scalar_lea.sflag [#allocation5], %s2381_s21  ;;  %s2656_s24 = int_to_ptr.vmem [resolvable:$true] %s1647_s24 }
  0x45   : > { %1878 = vmatprep.subr.bf16.mxu0 %v2050_v1  ;;  %1957 = vmatprep.subr.bf16.mxu1 %v2050_v1  ;;  %v2058_v5 = vld [vmem:[%s2385_s6 + $0x80] sm:$0xff]   ;;  %v2059_v10 = vld [vmem:[%s2385_s6 + $0x8] sm:$0xff]   ;;  %v2061_v12 = vld [vmem:[%s2385_s6 + $0x10] sm:$0xff]   ;;  %s2143_s12 = scalar_lea.vmem %s2656_s24, 8192  ;;  %p2728_p4 = scmp.ne.s32.totalorder %s2724_s13, 0 }
  0x46   : > { %1892 = vmatprep.mubr.bf16.mxu0 %v2057_v4  ;;  %1924 = vmatprep.mubr.bf16.mxu1 %v2058_v5  ;;  %v2056_v9 = vld [vmem:[#allocation6] sm:$0xff]   ;;  %v2060_v11 = vld [vmem:[%s2385_s6 + $0x88] sm:$0xff]   ;;  %v2062_v13 = vld [vmem:[%s2385_s6 + $0x90] sm:$0xff]   ;;  %p2144_p1 = scmp.ne.s32.totalorder %s2656_s24, %s2143_s12  ;;  %s2233_s22 = smov [#allocation8]  }
  0x47   : > { %v2063_v14 = vld [vmem:[%s2385_s6 + $0x18] sm:$0xff]   ;;  %v2065_v16 = vld [vmem:[%s2385_s6 + $0x20] sm:$0xff]   ;;  %v2067_v18 = vld [vmem:[%s2385_s6 + $0x28] sm:$0xff]   ;;  %s2147_s1 = sshll.u32 %s2233_s22, 4  ;;  %s2148_s1 = int_to_ptr.vmem [resolvable:$false] %s2147_s1 }
  0x48   : > { %1879 = vmatpush3.bf16.msra.mxu0 %v2050_v1  ;;  %1965 = vmatpush3.bf16.msra.mxu1 %v2050_v1  ;;  %v2064_v15 = vld [vmem:[%s2385_s6 + $0x98] sm:$0xff]   ;;  %v2066_v17 = vld [vmem:[%s2385_s6 + $0xa0] sm:$0xff]   ;;  %v2068_v19 = vld [vmem:[%s2385_s6 + $0xa8] sm:$0xff]   ;;  %p2145_p8 = pnand %p2144_p1, %p2728_p4  ;;  %s2149_s30 = scalar_lea.vmem %s2148_s1, 16384 }
  0x49   : > { %1880 = vmatprep.subr.bf16.mxu0 %v2051_v2  ;;  %1958 = vmatprep.subr.bf16.mxu1 %v2051_v2  ;;  %v2069_v20 = vld [vmem:[%s2385_s6 + $0x30] sm:$0xff]   ;;  %v2071_v22 = vld [vmem:[%s2385_s6 + $0x38] sm:$0xff]   ;;  %v2073_v24 = vld [vmem:[%s2385_s6 + $0x40] sm:$0xff]   ;;  %p2150_p13 = scmp.lt.s32.totalorder %s2656_s24, %s2148_s1  ;;  %p2151_p0 = scmp.lt.s32.totalorder %s2149_s30, %s2143_s12 }
  0x4a   : > { %v2070_v21 = vld [vmem:[%s2385_s6 + $0xb0] sm:$0xff]   ;;  %v2072_v23 = vld [vmem:[%s2385_s6 + $0xb8] sm:$0xff]   ;;  %v2074_v25 = vld [vmem:[%s2385_s6 + $0xc0] sm:$0xff]   ;;  %p2146_p12 = pneg %p2145_p8 }
  0x4b   : > { %v2075_v26 = vld [vmem:[%s2385_s6 + $0x48] sm:$0xff]   ;;  %v2077_v28 = vld [vmem:[%s2385_s6 + $0x50] sm:$0xff]   ;;  %v2079_v30 = vld [vmem:[%s2385_s6 + $0x58] sm:$0xff]   ;;  %p2152_p2 = por %p2151_p0, %p2150_p13 }
  0x4c   : > { %1881 = vmatpush3.bf16.msra.mxu0 %v2051_v2  ;;  %1966 = vmatpush3.bf16.msra.mxu1 %v2051_v2  ;;  %v2076_v27 = vld [vmem:[%s2385_s6 + $0xc8] sm:$0xff]   ;;  %v2078_v29 = vld [vmem:[%s2385_s6 + $0xd0] sm:$0xff]   ;;  %v2080_v31 = vld [vmem:[%s2385_s6 + $0xd8] sm:$0xff]  }
  0x4d   : > { %1882 = vmatprep.subr.bf16.mxu0 %v2052_v3  ;;  %1959 = vmatprep.subr.bf16.mxu1 %v2052_v3  ;;  %v2081_v32 = vld [vmem:[%s2385_s6 + $0x60] sm:$0xff]   ;;  %v2083_v34 = vld [vmem:[%s2385_s6 + $0x68] sm:$0xff]   ;;  %v2085_v36 = vld [vmem:[%s2385_s6 + $0x70] sm:$0xff]   ;;  %p2153_p3 = pnand %p2152_p2, %p2146_p12 }
  0x4e   : > { %v2082_v33 = vld [vmem:[%s2385_s6 + $0xe0] sm:$0xff]   ;;  %v2084_v35 = vld [vmem:[%s2385_s6 + $0xe8] sm:$0xff]   ;;  %v2086_v37 = vld [vmem:[%s2385_s6 + $0xf0] sm:$0xff]  }
  0x4f   : > { %v2087_v38 = vld [vmem:[%s2385_s6 + $0x78] sm:$0xff]   ;;  %v2430_v40 = vld [vmem:[%s2709_s2] ss:$0 sm:$0xff] }
  0x50   : > { %1883 = vmatpush3.bf16.msra.mxu0 %v2052_v3  ;;  %1967 = vmatpush3.bf16.msra.mxu1 %v2052_v3  ;;  %v2088_v39 = vld [vmem:[%s2385_s6 + $0xf8] sm:$0xff]   ;;  %v2435_v42 = vld [vmem:[%s2710_s3] ss:$0 sm:$0xff] }
  0x51   : > { %1884 = vmatprep.subr.bf16.mxu0 %v2053_v6  ;;  %1960 = vmatprep.subr.bf16.mxu1 %v2053_v6 }
  0x54   : > { %1885 = vmatpush3.bf16.msra.mxu0 %v2053_v6  ;;  %1968 = vmatpush3.bf16.msra.mxu1 %v2053_v6 }
  0x55   : > { %1886 = vmatprep.subr.bf16.mxu0 %v2054_v7  ;;  %1961 = vmatprep.subr.bf16.mxu1 %v2054_v7 }
  0x58   : > { %1887 = vmatpush3.bf16.msra.mxu0 %v2054_v7  ;;  %1969 = vmatpush3.bf16.msra.mxu1 %v2054_v7 }
  0x59   : > { %1888 = vmatprep.subr.bf16.mxu0 %v2055_v8  ;;  %1962 = vmatprep.subr.bf16.mxu1 %v2055_v8 }
  0x5c   : > { %1889 = vmatpush3.bf16.msra.mxu0 %v2055_v8  ;;  %1970 = vmatpush3.bf16.msra.mxu1 %v2055_v8 }
  0x5d   : > { %1890 = vmatprep.subr.bf16.mxu0 %v2056_v9  ;;  %1963 = vmatprep.subr.bf16.mxu1 %v2056_v9 }
  0x60   : > { %1891 = vmatpush3.bf16.msra.mxu0 %v2056_v9  ;;  %1971 = vmatpush3.bf16.msra.mxu1 %v2056_v9 }
  0x63   : > { %1893 = vmatmul.mubr.bf16.vlgmr.msra.gmra.mxu0 %v2059_v10  ;;  %1925 = vmatmul.mubr.bf16.vlgmr.msra.gmra.mxu1 %v2060_v11 }
  0x64   : > { %1896 = vmatprep.mubr.bf16.mxu0 %v2061_v12  ;;  %1928 = vmatprep.mubr.bf16.mxu1 %v2062_v13 }
  0x6b   : > { %1897 = vmatmul.mubr.bf16.gmra.mxu0 %v2063_v14  ;;  %1929 = vmatmul.mubr.bf16.gmra.mxu1 %v2064_v15 }
  0x6c   : > { %1900 = vmatprep.mubr.bf16.mxu0 %v2065_v16  ;;  %1932 = vmatprep.mubr.bf16.mxu1 %v2066_v17 }
  0x73   : > { %1901 = vmatmul.mubr.bf16.gmra.mxu0 %v2067_v18  ;;  %1933 = vmatmul.mubr.bf16.gmra.mxu1 %v2068_v19 }
  0x74   : > { %1904 = vmatprep.mubr.bf16.mxu0 %v2069_v20  ;;  %1936 = vmatprep.mubr.bf16.mxu1 %v2070_v21 }
  0x7b   : > { %1905 = vmatmul.mubr.bf16.gmra.mxu0 %v2071_v22  ;;  %1937 = vmatmul.mubr.bf16.gmra.mxu1 %v2072_v23 }
  0x7c   : > { %1908 = vmatprep.mubr.bf16.mxu0 %v2073_v24  ;;  %1940 = vmatprep.mubr.bf16.mxu1 %v2074_v25 }
  0x83   : > { %1909 = vmatmul.mubr.bf16.gmra.mxu0 %v2075_v26  ;;  %1941 = vmatmul.mubr.bf16.gmra.mxu1 %v2076_v27 }
  0x84   : > { %1912 = vmatprep.mubr.bf16.mxu0 %v2077_v28  ;;  %1944 = vmatprep.mubr.bf16.mxu1 %v2078_v29 }
  0x8b   : > { %1913 = vmatmul.mubr.bf16.gmra.mxu0 %v2079_v30  ;;  %1945 = vmatmul.mubr.bf16.gmra.mxu1 %v2080_v31 }
  0x8c   : > { %1916 = vmatprep.mubr.bf16.mxu0 %v2081_v32  ;;  %1948 = vmatprep.mubr.bf16.mxu1 %v2082_v33 }
  0x93   : > { %1917 = vmatmul.mubr.bf16.gmra.mxu0 %v2083_v34  ;;  %1949 = vmatmul.mubr.bf16.gmra.mxu1 %v2084_v35 }
  0x94   : > { %1920 = vmatprep.mubr.bf16.mxu0 %v2085_v36  ;;  %1952 = vmatprep.mubr.bf16.mxu1 %v2086_v37 }
  0x9b   : > { %1921 = vmatmul.mubr.bf16.gmra.mxu0 %v2087_v38  ;;  %1953 = vmatmul.mubr.bf16.gmra.mxu1 %v2088_v39 }
 0x123   : > { %v1894_v41 = vpop.f32.mrf.mxu0  ;;  %v1926_v43 = vpop.f32.mrf.mxu1 }
 0x124   : > { %v1243_v44 = vmul.f32 %v1894_v41, %v2430_v40  ;;  %v1275_v45 = vmul.f32 %v1926_v43, %v2430_v40 }
 0x125   : > { %v784_v46 = vpop.f32.mrf.mxu0  ;;  %v912_v47 = vpop.f32.mrf.mxu1 }
 0x126   : > { %v1314_v48 = vadd.f32 %v2435_v42, %v1243_v44  ;;  %v1346_v49 = vadd.f32 %v2435_v42, %v1275_v45  ;;  %v1241_v50 = vmul.f32 %v2430_v40, %v784_v46  ;;  %v1273_v51 = vmul.f32 %v2430_v40, %v912_v47 }
 0x127   : > { %v1895_v52 = vpop.f32.mrf.mxu0  ;;  %v1927_v53 = vpop.f32.mrf.mxu1 }
 0x128   : > { %vm1378_vm0 = vcmp.ge.f32.partialorder %v1314_v48, 0.0  ;;  %v1442_v54 = vmul.f32 0.0, %v1314_v48  ;;  %vm1410_vm1 = vcmp.ge.f32.partialorder %v1346_v49, 0.0  ;;  %v1474_v55 = vmul.f32 0.0, %v1346_v49 }
 0x129   : > { %v1312_v56 = vadd.f32 %v2435_v42, %v1241_v50  ;;  %v1344_v57 = vadd.f32 %v2435_v42, %v1273_v51  ;;  %v1244_v58 = vmul.f32 %v1895_v52, %v2430_v40  ;;  %v1276_v59 = vmul.f32 %v1927_v53, %v2430_v40  ;;  %v787_v60 = vpop.f32.mrf.mxu0  ;;  %v915_v61 = vpop.f32.mrf.mxu1 }
 0x12a   : > { %v1506_v62 = vsel %vm1378_vm0, %v1314_v48, %v1442_v54  ;;  %v1538_v63 = vsel %vm1410_vm1, %v1346_v49, %v1474_v55  ;;  %v1242_v0 = vmul.f32 %v2430_v40, %v787_v60  ;;  %v1274_v1 = vmul.f32 %v2430_v40, %v915_v61 }
 0x12b   : > { %1570 = vst [vmem:[%s2450_s9 + $0x10] sm:$0xff] %v1506_v62  ;;  %1602 = vst [vmem:[%s2450_s9 + $0x110] sm:$0xff] %v1538_v63  ;;  %vm1376_vm2 = vcmp.ge.f32.partialorder %v1312_v56, 0.0  ;;  %v1440_v2 = vmul.f32 0.0, %v1312_v56  ;;  %vm1408_vm3 = vcmp.ge.f32.partialorder %v1344_v57, 0.0  ;;  %v1472_v3 = vmul.f32 0.0, %v1344_v57  ;;  %v1898_v4 = vpop.f32.mrf.mxu0  ;;  %v1930_v5 = vpop.f32.mrf.mxu1 }
 0x12c   : > { %v1315_v6 = vadd.f32 %v2435_v42, %v1244_v58  ;;  %v1347_v7 = vadd.f32 %v2435_v42, %v1276_v59  ;;  %v1313_v8 = vadd.f32 %v2435_v42, %v1242_v0  ;;  %v1345_v9 = vadd.f32 %v2435_v42, %v1274_v1 }
 0x12d   : > { %v1504_v10 = vsel %vm1376_vm2, %v1312_v56, %v1440_v2  ;;  %v1536_v11 = vsel %vm1408_vm3, %v1344_v57, %v1472_v3  ;;  %v1247_v12 = vmul.f32 %v1898_v4, %v2430_v40  ;;  %v1279_v13 = vmul.f32 %v1930_v5, %v2430_v40  ;;  %v800_v14 = vpop.f32.mrf.mxu0  ;;  %v928_v15 = vpop.f32.mrf.mxu1 }
 0x12e   : > { %1568 = vst [vmem:[%s2450_s9] sm:$0xff] %v1504_v10  ;;  %1600 = vst [vmem:[%s2450_s9 + $0x100] sm:$0xff] %v1536_v11  ;;  %vm1379_vm4 = vcmp.ge.f32.partialorder %v1315_v6, 0.0  ;;  %v1443_v16 = vmul.f32 0.0, %v1315_v6  ;;  %vm1411_vm5 = vcmp.ge.f32.partialorder %v1347_v7, 0.0  ;;  %v1475_v17 = vmul.f32 0.0, %v1347_v7 }
 0x12f   : > { %vm1377_vm6 = vcmp.ge.f32.partialorder %v1313_v8, 0.0  ;;  %v1441_v18 = vmul.f32 0.0, %v1313_v8  ;;  %vm1409_vm7 = vcmp.ge.f32.partialorder %v1345_v9, 0.0  ;;  %v1473_v19 = vmul.f32 0.0, %v1345_v9  ;;  %v1899_v20 = vpop.f32.mrf.mxu0  ;;  %v1931_v21 = vpop.f32.mrf.mxu1 }
 0x130   : > { %v1507_v22 = vsel %vm1379_vm4, %v1315_v6, %v1443_v16  ;;  %v1539_v23 = vsel %vm1411_vm5, %v1347_v7, %v1475_v17  ;;  %v1318_v24 = vadd.f32 %v2435_v42, %v1247_v12  ;;  %v1350_v25 = vadd.f32 %v2435_v42, %v1279_v13 }
 0x131   : > { %1571 = vst [vmem:[%s2450_s9 + $0x18] sm:$0xff] %v1507_v22  ;;  %1603 = vst [vmem:[%s2450_s9 + $0x118] sm:$0xff] %v1539_v23  ;;  %v1505_v26 = vsel %vm1377_vm6, %v1313_v8, %v1441_v18  ;;  %v1537_v27 = vsel %vm1409_vm7, %v1345_v9, %v1473_v19  ;;  %v1245_v28 = vmul.f32 %v2430_v40, %v800_v14  ;;  %v803_v30 = vpop.f32.mrf.mxu0  ;;  %v931_v31 = vpop.f32.mrf.mxu1 }
 0x132   : > { %v1277_v29 = vmul.f32 %v2430_v40, %v928_v15  ;;  %1569 = vst [vmem:[%s2450_s9 + $0x8] sm:$0xff] %v1505_v26  ;;  %1601 = vst [vmem:[%s2450_s9 + $0x108] sm:$0xff] %v1537_v27  ;;  %vm1382_vm8 = vcmp.ge.f32.partialorder %v1318_v24, 0.0  ;;  %v1446_v32 = vmul.f32 0.0, %v1318_v24  ;;  %vm1414_vm9 = vcmp.ge.f32.partialorder %v1350_v25, 0.0 }
 0x133   : > { %v1478_v33 = vmul.f32 0.0, %v1350_v25  ;;  %v1316_v34 = vadd.f32 %v2435_v42, %v1245_v28  ;;  %v1248_v36 = vmul.f32 %v1899_v20, %v2430_v40  ;;  %v1280_v37 = vmul.f32 %v1931_v21, %v2430_v40  ;;  %v1902_v38 = vpop.f32.mrf.mxu0  ;;  %v1934_v39 = vpop.f32.mrf.mxu1 }
 0x134   : > { %v1348_v35 = vadd.f32 %v2435_v42, %v1277_v29  ;;  %v1510_v41 = vsel %vm1382_vm8, %v1318_v24, %v1446_v32  ;;  %v1246_v44 = vmul.f32 %v2430_v40, %v803_v30  ;;  %v1278_v45 = vmul.f32 %v2430_v40, %v931_v31 }
 0x135   : > { %v1542_v43 = vsel %vm1414_vm9, %v1350_v25, %v1478_v33  ;;  %1574 = vst [vmem:[%s2450_s9 + $0x30] sm:$0xff] %v1510_v41  ;;  %vm1380_vm10 = vcmp.ge.f32.partialorder %v1316_v34, 0.0  ;;  %v1444_v46 = vmul.f32 0.0, %v1316_v34  ;;  %v816_v48 = vpop.f32.mrf.mxu0  ;;  %v944_v49 = vpop.f32.mrf.mxu1  ;;  %v1319_v50 = vadd.f32 %v2435_v42, %v1248_v36 }
 0x136   : > { %1606 = vst [vmem:[%s2450_s9 + $0x130] sm:$0xff] %v1542_v43  ;;  %vm1412_vm11 = vcmp.ge.f32.partialorder %v1348_v35, 0.0  ;;  %v1476_v47 = vmul.f32 0.0, %v1348_v35  ;;  %v1351_v51 = vadd.f32 %v2435_v42, %v1280_v37  ;;  %v1317_v52 = vadd.f32 %v2435_v42, %v1246_v44 }
 0x137   : > { %v1349_v53 = vadd.f32 %v2435_v42, %v1278_v45  ;;  %v1508_v54 = vsel %vm1380_vm10, %v1316_v34, %v1444_v46  ;;  %v1251_v56 = vmul.f32 %v1902_v38, %v2430_v40  ;;  %v1283_v57 = vmul.f32 %v1934_v39, %v2430_v40  ;;  %v1903_v58 = vpop.f32.mrf.mxu0  ;;  %v1935_v59 = vpop.f32.mrf.mxu1 }
 0x138   : > { %v1540_v55 = vsel %vm1412_vm11, %v1348_v35, %v1476_v47  ;;  %1572 = vst [vmem:[%s2450_s9 + $0x20] sm:$0xff] %v1508_v54  ;;  %vm1383_vm12 = vcmp.ge.f32.partialorder %v1319_v50, 0.0  ;;  %v1447_v60 = vmul.f32 0.0, %v1319_v50  ;;  %vm1415_vm13 = vcmp.ge.f32.partialorder %v1351_v51, 0.0 }
 0x139   : > { %1604 = vst [vmem:[%s2450_s9 + $0x120] sm:$0xff] %v1540_v55  ;;  %v1479_v61 = vmul.f32 0.0, %v1351_v51  ;;  %vm1381_vm14 = vcmp.ge.f32.partialorder %v1317_v52, 0.0  ;;  %v1445_v62 = vmul.f32 0.0, %v1317_v52  ;;  %vm1413_vm15 = vcmp.ge.f32.partialorder %v1349_v53, 0.0  ;;  %v819_v0 = vpop.f32.mrf.mxu0  ;;  %v947_v1 = vpop.f32.mrf.mxu1 }
 0x13a   : > { %v1477_v63 = vmul.f32 0.0, %v1349_v53  ;;  %v1511_v2 = vsel %vm1383_vm12, %v1319_v50, %v1447_v60  ;;  %v1322_v4 = vadd.f32 %v2435_v42, %v1251_v56  ;;  %v1354_v5 = vadd.f32 %v2435_v42, %v1283_v57 }
 0x13b   : > { %v1543_v3 = vsel %vm1415_vm13, %v1351_v51, %v1479_v61  ;;  %1575 = vst [vmem:[%s2450_s9 + $0x38] sm:$0xff] %v1511_v2  ;;  %v1509_v6 = vsel %vm1381_vm14, %v1317_v52, %v1445_v62  ;;  %v1249_v8 = vmul.f32 %v2430_v40, %v816_v48  ;;  %v1281_v9 = vmul.f32 %v2430_v40, %v944_v49  ;;  %v1906_v10 = vpop.f32.mrf.mxu0  ;;  %v1938_v11 = vpop.f32.mrf.mxu1 }
 0x13c   : > { %1607 = vst [vmem:[%s2450_s9 + $0x138] sm:$0xff] %v1543_v3  ;;  %v1541_v7 = vsel %vm1413_vm15, %v1349_v53, %v1477_v63  ;;  %1573 = vst [vmem:[%s2450_s9 + $0x28] sm:$0xff] %v1509_v6  ;;  %vm1386_vm0 = vcmp.ge.f32.partialorder %v1322_v4, 0.0  ;;  %v1450_v12 = vmul.f32 0.0, %v1322_v4  ;;  %vm1418_vm1 = vcmp.ge.f32.partialorder %v1354_v5, 0.0 }
 0x13d   : > { %1605 = vst [vmem:[%s2450_s9 + $0x128] sm:$0xff] %v1541_v7  ;;  %v1482_v13 = vmul.f32 0.0, %v1354_v5  ;;  %v1320_v14 = vadd.f32 %v2435_v42, %v1249_v8  ;;  %v1352_v15 = vadd.f32 %v2435_v42, %v1281_v9  ;;  %v1252_v16 = vmul.f32 %v1903_v58, %v2430_v40  ;;  %v832_v18 = vpop.f32.mrf.mxu0  ;;  %v960_v19 = vpop.f32.mrf.mxu1 }
 0x13e   : > { %v1284_v17 = vmul.f32 %v1935_v59, %v2430_v40  ;;  %v1514_v20 = vsel %vm1386_vm0, %v1322_v4, %v1450_v12  ;;  %v1250_v22 = vmul.f32 %v2430_v40, %v819_v0  ;;  %v1282_v23 = vmul.f32 %v2430_v40, %v947_v1 }
 0x13f   : > { %v1546_v21 = vsel %vm1418_vm1, %v1354_v5, %v1482_v13  ;;  %1578 = vst [vmem:[%s2450_s9 + $0x50] sm:$0xff] %v1514_v20  ;;  %vm1384_vm2 = vcmp.ge.f32.partialorder %v1320_v14, 0.0  ;;  %v1448_v24 = vmul.f32 0.0, %v1320_v14  ;;  %vm1416_vm3 = vcmp.ge.f32.partialorder %v1352_v15, 0.0  ;;  %v1907_v26 = vpop.f32.mrf.mxu0  ;;  %v1939_v27 = vpop.f32.mrf.mxu1 }
 0x140   : > { %1610 = vst [vmem:[%s2450_s9 + $0x150] sm:$0xff] %v1546_v21  ;;  %v1480_v25 = vmul.f32 0.0, %v1352_v15  ;;  %v1323_v28 = vadd.f32 %v2435_v42, %v1252_v16  ;;  %v1355_v29 = vadd.f32 %v2435_v42, %v1284_v17  ;;  %v1321_v30 = vadd.f32 %v2435_v42, %v1250_v22 }
 0x141   : > { %v1353_v31 = vadd.f32 %v2435_v42, %v1282_v23  ;;  %v1512_v32 = vsel %vm1384_vm2, %v1320_v14, %v1448_v24  ;;  %v1255_v34 = vmul.f32 %v1906_v10, %v2430_v40  ;;  %v1287_v35 = vmul.f32 %v1938_v11, %v2430_v40  ;;  %v835_v36 = vpop.f32.mrf.mxu0  ;;  %v963_v37 = vpop.f32.mrf.mxu1 }
 0x142   : > { %v1544_v33 = vsel %vm1416_vm3, %v1352_v15, %v1480_v25  ;;  %1576 = vst [vmem:[%s2450_s9 + $0x40] sm:$0xff] %v1512_v32  ;;  %vm1387_vm4 = vcmp.ge.f32.partialorder %v1323_v28, 0.0  ;;  %v1451_v38 = vmul.f32 0.0, %v1323_v28  ;;  %vm1419_vm5 = vcmp.ge.f32.partialorder %v1355_v29, 0.0 }
 0x143   : > { %1608 = vst [vmem:[%s2450_s9 + $0x140] sm:$0xff] %v1544_v33  ;;  %v1483_v39 = vmul.f32 0.0, %v1355_v29  ;;  %vm1385_vm6 = vcmp.ge.f32.partialorder %v1321_v30, 0.0  ;;  %v1449_v41 = vmul.f32 0.0, %v1321_v30  ;;  %vm1417_vm7 = vcmp.ge.f32.partialorder %v1353_v31, 0.0  ;;  %v1910_v44 = vpop.f32.mrf.mxu0  ;;  %v1942_v45 = vpop.f32.mrf.mxu1 }
 0x144   : > { %v1481_v43 = vmul.f32 0.0, %v1353_v31  ;;  %v1515_v46 = vsel %vm1387_vm4, %v1323_v28, %v1451_v38  ;;  %v1326_v48 = vadd.f32 %v2435_v42, %v1255_v34  ;;  %v1358_v49 = vadd.f32 %v2435_v42, %v1287_v35 }
 0x145   : > { %v1547_v47 = vsel %vm1419_vm5, %v1355_v29, %v1483_v39  ;;  %1579 = vst [vmem:[%s2450_s9 + $0x58] sm:$0xff] %v1515_v46  ;;  %v1513_v50 = vsel %vm1385_vm6, %v1321_v30, %v1449_v41  ;;  %v1253_v52 = vmul.f32 %v2430_v40, %v832_v18  ;;  %v1285_v53 = vmul.f32 %v2430_v40, %v960_v19  ;;  %v848_v54 = vpop.f32.mrf.mxu0  ;;  %v976_v55 = vpop.f32.mrf.mxu1 }
 0x146   : > { %1611 = vst [vmem:[%s2450_s9 + $0x158] sm:$0xff] %v1547_v47  ;;  %v1545_v51 = vsel %vm1417_vm7, %v1353_v31, %v1481_v43  ;;  %1577 = vst [vmem:[%s2450_s9 + $0x48] sm:$0xff] %v1513_v50  ;;  %vm1390_vm8 = vcmp.ge.f32.partialorder %v1326_v48, 0.0  ;;  %v1454_v56 = vmul.f32 0.0, %v1326_v48  ;;  %vm1422_vm9 = vcmp.ge.f32.partialorder %v1358_v49, 0.0 }
 0x147   : > { %1609 = vst [vmem:[%s2450_s9 + $0x148] sm:$0xff] %v1545_v51  ;;  %v1486_v57 = vmul.f32 0.0, %v1358_v49  ;;  %v1324_v58 = vadd.f32 %v2435_v42, %v1253_v52  ;;  %v1356_v59 = vadd.f32 %v2435_v42, %v1285_v53  ;;  %v1256_v60 = vmul.f32 %v1907_v26, %v2430_v40  ;;  %v1911_v62 = vpop.f32.mrf.mxu0  ;;  %v1943_v63 = vpop.f32.mrf.mxu1 }
 0x148   : > { %v1288_v61 = vmul.f32 %v1939_v27, %v2430_v40  ;;  %v1518_v0 = vsel %vm1390_vm8, %v1326_v48, %v1454_v56  ;;  %v1254_v2 = vmul.f32 %v2430_v40, %v835_v36  ;;  %v1286_v3 = vmul.f32 %v2430_v40, %v963_v37 }
 0x149   : > { %v1550_v1 = vsel %vm1422_vm9, %v1358_v49, %v1486_v57  ;;  %1582 = vst [vmem:[%s2450_s9 + $0x70] sm:$0xff] %v1518_v0  ;;  %vm1388_vm10 = vcmp.ge.f32.partialorder %v1324_v58, 0.0  ;;  %v1452_v4 = vmul.f32 0.0, %v1324_v58  ;;  %vm1420_vm11 = vcmp.ge.f32.partialorder %v1356_v59, 0.0  ;;  %v851_v6 = vpop.f32.mrf.mxu0  ;;  %v979_v7 = vpop.f32.mrf.mxu1 }
 0x14a   : > { %1614 = vst [vmem:[%s2450_s9 + $0x170] sm:$0xff] %v1550_v1  ;;  %v1484_v5 = vmul.f32 0.0, %v1356_v59  ;;  %v1327_v8 = vadd.f32 %v2435_v42, %v1256_v60  ;;  %v1359_v9 = vadd.f32 %v2435_v42, %v1288_v61  ;;  %v1325_v10 = vadd.f32 %v2435_v42, %v1254_v2 }
 0x14b   : > { %v1357_v11 = vadd.f32 %v2435_v42, %v1286_v3  ;;  %v1516_v12 = vsel %vm1388_vm10, %v1324_v58, %v1452_v4  ;;  %v1259_v14 = vmul.f32 %v1910_v44, %v2430_v40  ;;  %v1291_v15 = vmul.f32 %v1942_v45, %v2430_v40  ;;  %v1914_v16 = vpop.f32.mrf.mxu0  ;;  %v1946_v17 = vpop.f32.mrf.mxu1 }
 0x14c   : > { %v1548_v13 = vsel %vm1420_vm11, %v1356_v59, %v1484_v5  ;;  %1580 = vst [vmem:[%s2450_s9 + $0x60] sm:$0xff] %v1516_v12  ;;  %vm1391_vm12 = vcmp.ge.f32.partialorder %v1327_v8, 0.0  ;;  %v1455_v18 = vmul.f32 0.0, %v1327_v8  ;;  %vm1423_vm13 = vcmp.ge.f32.partialorder %v1359_v9, 0.0 }
 0x14d   : > { %1612 = vst [vmem:[%s2450_s9 + $0x160] sm:$0xff] %v1548_v13  ;;  %v1487_v19 = vmul.f32 0.0, %v1359_v9  ;;  %vm1389_vm14 = vcmp.ge.f32.partialorder %v1325_v10, 0.0  ;;  %v1453_v20 = vmul.f32 0.0, %v1325_v10  ;;  %vm1421_vm15 = vcmp.ge.f32.partialorder %v1357_v11, 0.0  ;;  %v2534_v22 = vpop.f32.mrf.mxu0  ;;  %v2536_v23 = vpop.f32.mrf.mxu1 }
 0x14e   : > { %v1485_v21 = vmul.f32 0.0, %v1357_v11  ;;  %v1519_v24 = vsel %vm1391_vm12, %v1327_v8, %v1455_v18  ;;  %v1330_v26 = vadd.f32 %v2435_v42, %v1259_v14  ;;  %v1362_v27 = vadd.f32 %v2435_v42, %v1291_v15 }
 0x14f   : > { %v1551_v25 = vsel %vm1423_vm13, %v1359_v9, %v1487_v19  ;;  %1583 = vst [vmem:[%s2450_s9 + $0x78] sm:$0xff] %v1519_v24  ;;  %v1517_v28 = vsel %vm1389_vm14, %v1325_v10, %v1453_v20  ;;  %v1257_v30 = vmul.f32 %v2430_v40, %v848_v54  ;;  %v1289_v31 = vmul.f32 %v2430_v40, %v976_v55  ;;  %v2544_v32 = vpop.f32.mrf.mxu0  ;;  %v2546_v33 = vpop.f32.mrf.mxu1 }
 0x150   : > { %1615 = vst [vmem:[%s2450_s9 + $0x178] sm:$0xff] %v1551_v25  ;;  %v1549_v29 = vsel %vm1421_vm15, %v1357_v11, %v1485_v21  ;;  %1581 = vst [vmem:[%s2450_s9 + $0x68] sm:$0xff] %v1517_v28  ;;  %vm1394_vm0 = vcmp.ge.f32.partialorder %v1330_v26, 0.0  ;;  %v1458_v34 = vmul.f32 0.0, %v1330_v26  ;;  %vm1426_vm1 = vcmp.ge.f32.partialorder %v1362_v27, 0.0 }
 0x151   : > { %1613 = vst [vmem:[%s2450_s9 + $0x168] sm:$0xff] %v1549_v29  ;;  %v1490_v35 = vmul.f32 0.0, %v1362_v27  ;;  %v1328_v36 = vadd.f32 %v2435_v42, %v1257_v30  ;;  %v1360_v37 = vadd.f32 %v2435_v42, %v1289_v31  ;;  %v1260_v38 = vmul.f32 %v1911_v62, %v2430_v40  ;;  %v867_v41 = vpop.f32.mrf.mxu0  ;;  %v995_v43 = vpop.f32.mrf.mxu1 }
 0x152   : > { %v1292_v39 = vmul.f32 %v1943_v63, %v2430_v40  ;;  %v1522_v44 = vsel %vm1394_vm0, %v1330_v26, %v1458_v34  ;;  %v1258_v46 = vmul.f32 %v2430_v40, %v851_v6  ;;  %v1290_v47 = vmul.f32 %v2430_v40, %v979_v7 }
 0x153   : > { %v1554_v45 = vsel %vm1426_vm1, %v1362_v27, %v1490_v35  ;;  %1586 = vst [vmem:[%s2450_s9 + $0x90] sm:$0xff] %v1522_v44  ;;  %vm1392_vm2 = vcmp.ge.f32.partialorder %v1328_v36, 0.0  ;;  %v1456_v48 = vmul.f32 0.0, %v1328_v36  ;;  %vm1424_vm3 = vcmp.ge.f32.partialorder %v1360_v37, 0.0  ;;  %v2558_v50 = vpop.f32.mrf.mxu0  ;;  %v1950_v51 = vpop.f32.mrf.mxu1 }
 0x154   : > { %1618 = vst [vmem:[%s2450_s9 + $0x190] sm:$0xff] %v1554_v45  ;;  %v1488_v49 = vmul.f32 0.0, %v1360_v37  ;;  %v1331_v52 = vadd.f32 %v2435_v42, %v1260_v38  ;;  %v1363_v53 = vadd.f32 %v2435_v42, %v1292_v39  ;;  %v1329_v54 = vadd.f32 %v2435_v42, %v1258_v46 }
 0x155   : > { %v1361_v55 = vadd.f32 %v2435_v42, %v1290_v47  ;;  %v1520_v56 = vsel %vm1392_vm2, %v1328_v36, %v1456_v48  ;;  %v1263_v58 = vmul.f32 %v1914_v16, %v2430_v40  ;;  %v1295_v59 = vmul.f32 %v1946_v17, %v2430_v40  ;;  %v2566_v60 = vpop.f32.mrf.mxu0  ;;  %v2568_v61 = vpop.f32.mrf.mxu1 }
 0x156   : > { %v1552_v57 = vsel %vm1424_vm3, %v1360_v37, %v1488_v49  ;;  %1584 = vst [vmem:[%s2450_s9 + $0x80] sm:$0xff] %v1520_v56  ;;  %vm1395_vm4 = vcmp.ge.f32.partialorder %v1331_v52, 0.0  ;;  %v1459_v62 = vmul.f32 0.0, %v1331_v52  ;;  %vm1427_vm5 = vcmp.ge.f32.partialorder %v1363_v53, 0.0 }
 0x157   : > { %1616 = vst [vmem:[%s2450_s9 + $0x180] sm:$0xff] %v1552_v57  ;;  %v1491_v63 = vmul.f32 0.0, %v1363_v53  ;;  %vm1393_vm6 = vcmp.ge.f32.partialorder %v1329_v54, 0.0  ;;  %v1457_v0 = vmul.f32 0.0, %v1329_v54  ;;  %vm1425_vm7 = vcmp.ge.f32.partialorder %v1361_v55, 0.0  ;;  %v1919_v10 = vpop.f32.mrf.mxu0  ;;  %v1951_v11 = vpop.f32.mrf.mxu1 }
 0x158   : > { %v1489_v1 = vmul.f32 0.0, %v1361_v55  ;;  %v1523_v2 = vsel %vm1395_vm4, %v1331_v52, %v1459_v62  ;;  %v1334_v4 = vadd.f32 %v2435_v42, %v1263_v58  ;;  %v1366_v5 = vadd.f32 %v2435_v42, %v1295_v59 }
 0x159   : > { %v1555_v3 = vsel %vm1427_vm5, %v1363_v53, %v1491_v63  ;;  %1587 = vst [vmem:[%s2450_s9 + $0x98] sm:$0xff] %v1523_v2  ;;  %v1521_v6 = vsel %vm1393_vm6, %v1329_v54, %v1457_v0  ;;  %v1261_v8 = vmul.f32 %v2430_v40, %v2534_v22  ;;  %v1293_v9 = vmul.f32 %v2430_v40, %v2536_v23  ;;  %v883_v24 = vpop.f32.mrf.mxu0  ;;  %v1011_v25 = vpop.f32.mrf.mxu1 }
 0x15a   : > { %1619 = vst [vmem:[%s2450_s9 + $0x198] sm:$0xff] %v1555_v3  ;;  %v1553_v7 = vsel %vm1425_vm7, %v1361_v55, %v1489_v1  ;;  %1585 = vst [vmem:[%s2450_s9 + $0x88] sm:$0xff] %v1521_v6  ;;  %vm1398_vm8 = vcmp.ge.f32.partialorder %v1334_v4, 0.0  ;;  %v1462_v12 = vmul.f32 0.0, %v1334_v4  ;;  %vm1430_vm9 = vcmp.ge.f32.partialorder %v1366_v5, 0.0 }
 0x15b   : > { %1617 = vst [vmem:[%s2450_s9 + $0x188] sm:$0xff] %v1553_v7  ;;  %v1494_v13 = vmul.f32 0.0, %v1366_v5  ;;  %v1332_v14 = vadd.f32 %v2435_v42, %v1261_v8  ;;  %v1364_v15 = vadd.f32 %v2435_v42, %v1293_v9  ;;  %v1264_v16 = vmul.f32 %v2544_v32, %v2430_v40  ;;  %v1922_v38 = vpop.f32.mrf.mxu0  ;;  %v1954_v39 = vpop.f32.mrf.mxu1 }
 0x15c   : > { %v1296_v17 = vmul.f32 %v2546_v33, %v2430_v40  ;;  %v1526_v18 = vsel %vm1398_vm8, %v1334_v4, %v1462_v12  ;;  %v1262_v20 = vmul.f32 %v2430_v40, %v867_v41  ;;  %v1294_v21 = vmul.f32 %v2430_v40, %v995_v43 }
 0x15d   : > { %v1558_v19 = vsel %vm1430_vm9, %v1366_v5, %v1494_v13  ;;  %1590 = vst [vmem:[%s2450_s9 + $0xb0] sm:$0xff] %v1526_v18  ;;  %vm1396_vm10 = vcmp.ge.f32.partialorder %v1332_v14, 0.0  ;;  %v1460_v22 = vmul.f32 0.0, %v1332_v14  ;;  %vm1428_vm11 = vcmp.ge.f32.partialorder %v1364_v15, 0.0  ;;  %v896_v56 = vpop.f32.mrf.mxu0  ;;  %v1024_v57 = vpop.f32.mrf.mxu1 }
 0x15e   : > { %1622 = vst [vmem:[%s2450_s9 + $0x1b0] sm:$0xff] %v1558_v19  ;;  %v1492_v23 = vmul.f32 0.0, %v1364_v15  ;;  %v1335_v26 = vadd.f32 %v2435_v42, %v1264_v16  ;;  %v1367_v27 = vadd.f32 %v2435_v42, %v1296_v17  ;;  %v1333_v28 = vadd.f32 %v2435_v42, %v1262_v20 }
 0x15f   : > { %v1365_v29 = vadd.f32 %v2435_v42, %v1294_v21  ;;  %v1524_v30 = vsel %vm1396_vm10, %v1332_v14, %v1460_v22  ;;  %v1267_v32 = vmul.f32 %v2558_v50, %v2430_v40  ;;  %v1299_v33 = vmul.f32 %v1950_v51, %v2430_v40  ;;  %v1923_v8 = vpop.f32.mrf.mxu0  ;;  %v1955_v9 = vpop.f32.mrf.mxu1 }
 0x160   : > { %v1556_v31 = vsel %vm1428_vm11, %v1364_v15, %v1492_v23  ;;  %1588 = vst [vmem:[%s2450_s9 + $0xa0] sm:$0xff] %v1524_v30  ;;  %vm1399_vm12 = vcmp.ge.f32.partialorder %v1335_v26, 0.0  ;;  %v1463_v34 = vmul.f32 0.0, %v1335_v26  ;;  %vm1431_vm13 = vcmp.ge.f32.partialorder %v1367_v27, 0.0 }
 0x161   : > { %1620 = vst [vmem:[%s2450_s9 + $0x1a0] sm:$0xff] %v1556_v31  ;;  %v1495_v35 = vmul.f32 0.0, %v1367_v27  ;;  %vm1397_vm14 = vcmp.ge.f32.partialorder %v1333_v28, 0.0  ;;  %v1461_v36 = vmul.f32 0.0, %v1333_v28  ;;  %vm1429_vm15 = vcmp.ge.f32.partialorder %v1365_v29, 0.0  ;;  %v899_v22 = vpop.f32.mrf.mxu0  ;;  %v1027_v23 = vpop.f32.mrf.mxu1 }
 0x162   : > { %v1493_v37 = vmul.f32 0.0, %v1365_v29  ;;  %v1527_v41 = vsel %vm1399_vm12, %v1335_v26, %v1463_v34  ;;  %v1338_v44 = vadd.f32 %v2435_v42, %v1267_v32  ;;  %v1370_v45 = vadd.f32 %v2435_v42, %v1299_v33 }
 0x163   : > { %v1559_v43 = vsel %vm1431_vm13, %v1367_v27, %v1495_v35  ;;  %1591 = vst [vmem:[%s2450_s9 + $0xb8] sm:$0xff] %v1527_v41  ;;  %v1525_v46 = vsel %vm1397_vm14, %v1333_v28, %v1461_v36  ;;  %v1265_v48 = vmul.f32 %v2430_v40, %v2566_v60  ;;  %v1297_v49 = vmul.f32 %v2430_v40, %v2568_v61 }
 0x164   : > { %1623 = vst [vmem:[%s2450_s9 + $0x1b8] sm:$0xff] %v1559_v43  ;;  %v1557_v47 = vsel %vm1429_vm15, %v1365_v29, %v1493_v37  ;;  %1589 = vst [vmem:[%s2450_s9 + $0xa8] sm:$0xff] %v1525_v46  ;;  %vm1402_vm0 = vcmp.ge.f32.partialorder %v1338_v44, 0.0  ;;  %v1466_v50 = vmul.f32 0.0, %v1338_v44  ;;  %vm1434_vm1 = vcmp.ge.f32.partialorder %v1370_v45, 0.0 }
 0x165   : > { %1621 = vst [vmem:[%s2450_s9 + $0x1a8] sm:$0xff] %v1557_v47  ;;  %v1498_v51 = vmul.f32 0.0, %v1370_v45  ;;  %v1336_v52 = vadd.f32 %v2435_v42, %v1265_v48  ;;  %v1368_v53 = vadd.f32 %v2435_v42, %v1297_v49  ;;  %v1268_v54 = vmul.f32 %v1919_v10, %v2430_v40 }
 0x166   : > { %v1300_v55 = vmul.f32 %v1951_v11, %v2430_v40  ;;  %v1530_v58 = vsel %vm1402_vm0, %v1338_v44, %v1466_v50  ;;  %v1266_v60 = vmul.f32 %v2430_v40, %v883_v24  ;;  %v1298_v61 = vmul.f32 %v2430_v40, %v1011_v25 }
 0x167   : > { %v1562_v59 = vsel %vm1434_vm1, %v1370_v45, %v1498_v51  ;;  %1594 = vst [vmem:[%s2450_s9 + $0xd0] sm:$0xff] %v1530_v58  ;;  %vm1400_vm2 = vcmp.ge.f32.partialorder %v1336_v52, 0.0  ;;  %v1464_v62 = vmul.f32 0.0, %v1336_v52  ;;  %vm1432_vm3 = vcmp.ge.f32.partialorder %v1368_v53, 0.0 }
 0x168   : > { %1626 = vst [vmem:[%s2450_s9 + $0x1d0] sm:$0xff] %v1562_v59  ;;  %v1496_v63 = vmul.f32 0.0, %v1368_v53  ;;  %v1339_v0 = vadd.f32 %v2435_v42, %v1268_v54  ;;  %v1371_v1 = vadd.f32 %v2435_v42, %v1300_v55  ;;  %v1337_v2 = vadd.f32 %v2435_v42, %v1266_v60 }
 0x169   : > { %v1369_v3 = vadd.f32 %v2435_v42, %v1298_v61  ;;  %v1528_v4 = vsel %vm1400_vm2, %v1336_v52, %v1464_v62  ;;  %v1271_v6 = vmul.f32 %v1922_v38, %v2430_v40  ;;  %v1303_v7 = vmul.f32 %v1954_v39, %v2430_v40 }
 0x16a   : > { %v1560_v5 = vsel %vm1432_vm3, %v1368_v53, %v1496_v63  ;;  %1592 = vst [vmem:[%s2450_s9 + $0xc0] sm:$0xff] %v1528_v4  ;;  %vm1403_vm4 = vcmp.ge.f32.partialorder %v1339_v0, 0.0  ;;  %v1467_v10 = vmul.f32 0.0, %v1339_v0  ;;  %vm1435_vm5 = vcmp.ge.f32.partialorder %v1371_v1, 0.0 }
 0x16b   : > { %1624 = vst [vmem:[%s2450_s9 + $0x1c0] sm:$0xff] %v1560_v5  ;;  %v1499_v11 = vmul.f32 0.0, %v1371_v1  ;;  %vm1401_vm6 = vcmp.ge.f32.partialorder %v1337_v2, 0.0  ;;  %v1465_v12 = vmul.f32 0.0, %v1337_v2  ;;  %vm1433_vm7 = vcmp.ge.f32.partialorder %v1369_v3, 0.0 }
 0x16c   : > { %v1497_v13 = vmul.f32 0.0, %v1369_v3  ;;  %v1531_v14 = vsel %vm1403_vm4, %v1339_v0, %v1467_v10  ;;  %v1342_v16 = vadd.f32 %v2435_v42, %v1271_v6  ;;  %v1374_v17 = vadd.f32 %v2435_v42, %v1303_v7 }
 0x16d   : > { %v1563_v15 = vsel %vm1435_vm5, %v1371_v1, %v1499_v11  ;;  %1595 = vst [vmem:[%s2450_s9 + $0xd8] sm:$0xff] %v1531_v14  ;;  %v1529_v18 = vsel %vm1401_vm6, %v1337_v2, %v1465_v12  ;;  %v1269_v20 = vmul.f32 %v2430_v40, %v896_v56  ;;  %v1301_v21 = vmul.f32 %v2430_v40, %v1024_v57 }
 0x16e   : > { %1627 = vst [vmem:[%s2450_s9 + $0x1d8] sm:$0xff] %v1563_v15  ;;  %v1561_v19 = vsel %vm1433_vm7, %v1369_v3, %v1497_v13  ;;  %1593 = vst [vmem:[%s2450_s9 + $0xc8] sm:$0xff] %v1529_v18  ;;  %vm1406_vm8 = vcmp.ge.f32.partialorder %v1342_v16, 0.0  ;;  %v1470_v24 = vmul.f32 0.0, %v1342_v16  ;;  %vm1438_vm9 = vcmp.ge.f32.partialorder %v1374_v17, 0.0 }
 0x16f   : > { %1625 = vst [vmem:[%s2450_s9 + $0x1c8] sm:$0xff] %v1561_v19  ;;  %v1502_v25 = vmul.f32 0.0, %v1374_v17  ;;  %v1340_v26 = vadd.f32 %v2435_v42, %v1269_v20  ;;  %v1372_v27 = vadd.f32 %v2435_v42, %v1301_v21  ;;  %v1272_v28 = vmul.f32 %v1923_v8, %v2430_v40 }
 0x170   : > { %v1304_v29 = vmul.f32 %v1955_v9, %v2430_v40  ;;  %v1534_v30 = vsel %vm1406_vm8, %v1342_v16, %v1470_v24  ;;  %v1270_v32 = vmul.f32 %v2430_v40, %v899_v22  ;;  %v1302_v33 = vmul.f32 %v2430_v40, %v1027_v23 }
 0x171   : > { %v1566_v31 = vsel %vm1438_vm9, %v1374_v17, %v1502_v25  ;;  %1598 = vst [vmem:[%s2450_s9 + $0xf0] sm:$0xff] %v1534_v30  ;;  %vm1404_vm10 = vcmp.ge.f32.partialorder %v1340_v26, 0.0  ;;  %v1468_v34 = vmul.f32 0.0, %v1340_v26  ;;  %vm1436_vm11 = vcmp.ge.f32.partialorder %v1372_v27, 0.0 }
 0x172   : > { %1630 = vst [vmem:[%s2450_s9 + $0x1f0] sm:$0xff] %v1566_v31  ;;  %v1500_v35 = vmul.f32 0.0, %v1372_v27  ;;  %v1343_v36 = vadd.f32 %v2435_v42, %v1272_v28  ;;  %v1375_v37 = vadd.f32 %v2435_v42, %v1304_v29  ;;  %v1341_v38 = vadd.f32 %v2435_v42, %v1270_v32 }
 0x173   : > { %v1373_v39 = vadd.f32 %v2435_v42, %v1302_v33  ;;  %v1532_v41 = vsel %vm1404_vm10, %v1340_v26, %v1468_v34 }
 0x174   : > { %v1564_v40 = vsel %vm1436_vm11, %v1372_v27, %v1500_v35  ;;  %1596 = vst [vmem:[%s2450_s9 + $0xe0] sm:$0xff] %v1532_v41  ;;  %vm1407_vm12 = vcmp.ge.f32.partialorder %v1343_v36, 0.0  ;;  %v1471_v43 = vmul.f32 0.0, %v1343_v36  ;;  %vm1439_vm13 = vcmp.ge.f32.partialorder %v1375_v37, 0.0 }
 0x175   : > { %1628 = vst [vmem:[%s2450_s9 + $0x1e0] sm:$0xff] %v1564_v40  ;;  %v1503_v44 = vmul.f32 0.0, %v1375_v37  ;;  %vm1405_vm14 = vcmp.ge.f32.partialorder %v1341_v38, 0.0  ;;  %v1469_v45 = vmul.f32 0.0, %v1341_v38  ;;  %vm1437_vm15 = vcmp.ge.f32.partialorder %v1373_v39, 0.0 }
 0x176   : > { %v1501_v42 = vmul.f32 0.0, %v1373_v39  ;;  %v1535_v46 = vsel %vm1407_vm12, %v1343_v36, %v1471_v43 }
 0x177   : > { %v1567_v47 = vsel %vm1439_vm13, %v1375_v37, %v1503_v44  ;;  %1599 = vst [vmem:[%s2450_s9 + $0xf8] sm:$0xff] %v1535_v46  ;;  %v1533_v48 = vsel %vm1405_vm14, %v1341_v38, %v1469_v45 }
 0x178   : > { %1631 = vst [vmem:[%s2450_s9 + $0x1f8] sm:$0xff] %v1567_v47  ;;  %v1565_v49 = vsel %vm1437_vm15, %v1373_v39, %v1501_v42  ;;  %1597 = vst [vmem:[%s2450_s9 + $0xe8] sm:$0xff] %v1533_v48 }
 0x179   : > { %1629 = vst [vmem:[%s2450_s9 + $0x1e8] sm:$0xff] %v1565_v49 }
 0x17a   : > { %2156 = shalt.err (!%p2153_p3)
}
 0x17b   : > { %s2157_s6 = scalar_lea.hbm %s2654_s11, 8192  ;;  %s2161_s27 = scalar_lea.hbm %s2711_s4, 24576 }
 0x17c   : > { %p2158_p5 = scmp.ne.s32.totalorder %s2654_s11, %s2157_s6  ;;  %p2162_p9 = scmp.lt.s32.totalorder %s2654_s11, %s2711_s4 }
 0x17d   : > { %p2163_p11 = scmp.lt.s32.totalorder %s2161_s27, %s2157_s6 }
 0x17e   : > { %p2159_p7 = pnand %p2158_p5, %p2728_p4 }
 0x17f   : > { %p2164_p10 = por %p2163_p11, %p2162_p9 }
 0x180   : > { %p2160_p6 = pneg %p2159_p7 }
 0x182   : > { %p2165_p1 = pnand %p2164_p10, %p2160_p6 }
 0x184   : > { %2168 = shalt.err (!%p2165_p1)
}
 0x185   : > { %s2234_s9 = smov 128   ;;  %s2235_s10 = smov 8  }
 0x186   : > { %1978 = dma.vmem_to_hbm [thread:$0]  (%p2728_p4), %s2656_s24, 8192, %s2654_s11, %s1633_s29, %s2234_s9, %s2234_s9, %s2235_s10  }
 0x187 PF: > { %p1995_p8 = scmp.ge.s32.totalorder %s2227_s20, 2  ;;  %s1662_s18 = sand.u32 1, %s2207_s15  }
 0x188   : > { %p2729_p12 = scmp.ne.s32.totalorder %s2719_s26, 0  ;;  %s1663_s14 = scalar_lea.sflag [#allocation5], %s1662_s18 }
 0x18a   : > { %p1989_p13 = pnand %p1995_p8, %p2729_p12 }
 0x18c   : > { %p1990_p0 = pneg %p1989_p13 }
 0x18e   : > { %2202 = dma.done.wait (%p1990_p0), %s1663_s14, 8192  }
 0x18f   : > { %2204 = vsyncadd (%p1990_p0), %s1663_s14, 4294959104  ;;  %s21_s20 = sadd.s32 1, %s2227_s20   ;;  %s2730_s15 = smov %s2211_s16 }
 0x190   : > { %p18_p2 = scmp.ge.s32.totalorder %s21_s20, 5   ;;  %s2731_s16 = smov %s2215_s17 }
 0x191   : > { %s2732_s17 = smov %s2359_s28  ;;  %s2733_s18 = smov %s2223_s19 }
 0x192   : > { %s2734_s19 = smov %s2736_s5  ;;  %20 = sbr.rel (!%p18_p2) target bundleno = 9 (0x9), region = 100 }
 0x197   :  { %1668 = vsyncpa [#allocation4], 1 }
 0x198   :  { %1670 = vsyncpa [#allocation4 + $0x1], 1 }
 0x199   :  { %1671 = vsyncpa [#allocation7], 1 }
 0x19a   :  { %1672 = vsyncpa [#allocation5], 1 }
 0x19b   :  { %1674 = vsyncpa [#allocation5 + $0x1], 1 }

</bundles_post_ra>
